<compile_context>
chip_gen: v6e
topology: v6e:2x2x1
jax: 0.10.0
libtpu: 0.0.40
codegen_flags: <defaults>
</compile_context>

<pallas_src>
import jax
import jax.numpy as jnp
from jax.experimental import pallas as pl
from jax.experimental.pallas import tpu as pltpu

H1, H2 = 400, 300          # logical hidden sizes (match the PyTorch module)
H1P, H2P = 512, 384        # lane-padded hidden sizes (multiples of 128)


def _round_up(n, m):
    return ((n + m - 1) // m) * m


def _choose_batch_tiling(B, tile_b):
    """Pick (tile_b, padded_b). Guarantees padded_b % tile_b == 0 and, for any
    batch of at least 16 rows, at least 2 grid blocks so the batch axis can be
    sharded across v7x's two TensorCores (harmless single extra step on
    v5e/v6e)."""
    tb = min(tile_b, _round_up(B, 8))
    padded_b = _round_up(B, tb)
    if padded_b // tb == 1 and padded_b >= 16:
        tb = _round_up((padded_b + 1) // 2, 8)
        padded_b = _round_up(B, tb)
    return tb, padded_b


def _critic_kernel(x_ref, a_ref, w1_ref, b1_ref, w2x_ref, w2a_ref, b2_ref,
                   w3_ref, b3_ref, o_ref):
    wdt = w1_ref.dtype      # bf16 on the fast path, f32 otherwise

    # layer 1: relu(x @ W1 + b1)    (f32 accumulation, f32 bias/relu)
    h1 = jnp.dot(x_ref[...].astype(wdt), w1_ref[...],
                 preferred_element_type=jnp.float32) + b1_ref[...]
    h1 = jnp.maximum(h1, 0.0)                      # (tb, 512), cols >= 400 are 0

    # layer 2: relu(concat([h1, a]) @ W2 + b2) == relu(h1 @ W2x + a @ W2a + b2)
    h2 = (jnp.dot(h1.astype(wdt), w2x_ref[...],
                  preferred_element_type=jnp.float32)
          + jnp.dot(a_ref[...].astype(wdt), w2a_ref[...],
                    preferred_element_type=jnp.float32)
          + b2_ref[...])
    h2 = jnp.maximum(h2, 0.0)                      # (tb, 384), cols >= 300 are 0

    # layer 3 (N=1): contract H2P (lane) dims of w3 (1, H2P) and h2 (tb, H2P)
    # -> batch lands on the lane axis, giving a lane-dense (1, tb) output row
    # with no relayout and no 1-lane masked stores.
    q_row = jax.lax.dot_general(
        w3_ref[...], h2,
        dimension_numbers=(((1,), (1,)), ((), ())),
        preferred_element_type=jnp.float32)        # (1, tb)
    o_ref[...] = (q_row + b3_ref[...]).astype(o_ref.dtype)


def critic_forward(x, a, kernel_params, *, tile_b=1024):
    """x: (B, obs_dim), a: (B, action_dim) -> (B, 1)."""
    B, obs_dim = x.shape
    act_dim = a.shape[1]
    x = x.astype(jnp.float32)
    a = a.astype(jnp.float32)

    tb, padded_b = _choose_batch_tiling(B, tile_b)
    if padded_b != B:
        x = jnp.pad(x, ((0, padded_b - B), (0, 0)))
        a = jnp.pad(a, ((0, padded_b - B), (0, 0)))
    num_tiles = padded_b // tb

    w1p, b1p, w2xp, w2ap, b2p, w3p, b3p = kernel_params

    out = pl.pallas_call(
        _critic_kernel,
        out_shape=jax.ShapeDtypeStruct((num_tiles, tb), jnp.float32),
        grid_spec=pltpu.PrefetchScalarGridSpec(
            num_scalar_prefetch=0,
            grid=(num_tiles,),
            in_specs=[
                pl.BlockSpec((tb, obs_dim), lambda i: (i, 0)),    # x, batch-tiled
                pl.BlockSpec((tb, act_dim), lambda i: (i, 0)),    # a, batch-tiled
                pl.BlockSpec((obs_dim, H1P), lambda i: (0, 0)),   # W1   (resident)
                pl.BlockSpec((1, H1P), lambda i: (0, 0)),         # b1
                pl.BlockSpec((H1P, H2P), lambda i: (0, 0)),       # W2x  (resident)
                pl.BlockSpec((act_dim, H2P), lambda i: (0, 0)),   # W2a  (resident)
                pl.BlockSpec((1, H2P), lambda i: (0, 0)),         # b2
                pl.BlockSpec((1, H2P), lambda i: (0, 0)),         # w3 as a row
                pl.BlockSpec((1, 1), lambda i: (0, 0)),           # b3
            ],
            out_specs=pl.BlockSpec((1, tb), lambda i: (i, 0)),    # lane-dense row
        ),
        compiler_params=pltpu.CompilerParams(
            dimension_semantics=("parallel",),   # megacore-shard the batch axis
            vmem_limit_bytes=32 * 1024 * 1024,   # safe on v7x (64 MiB physical)
        ),
    )(x, a, w1p, b1p, w2xp, w2ap, b2p, w3p, b3p)

    return out.reshape(-1)[:B].reshape(B, 1)


def init_critic_params(key, obs_dim, action_dim):
    """Raw (unpadded) params matching nn.Linear's U(-1/sqrt(fan_in), 1/sqrt(fan_in))."""
    ks = jax.random.split(key, 6)

    def uni(k, shape, fan_in):
        bound = 1.0 / jnp.sqrt(jnp.float32(fan_in))
        return jax.random.uniform(k, shape, jnp.float32, -bound, bound)

    # weights stored (in_features, out_features), i.e. transpose of PyTorch's layout
    w1 = uni(ks[0], (obs_dim, H1), obs_dim)
    b1 = uni(ks[1], (H1,), obs_dim)
    w2 = uni(ks[2], (H1 + action_dim, H2), H1 + action_dim)
    b2 = uni(ks[3], (H2,), H1 + action_dim)
    w3 = uni(ks[4], (H2, 1), H2)
    b3 = uni(ks[5], (1,), H2)
    return (w1, b1, w2, b2, w3, b3)


def pack_params_for_kernel(raw_params, obs_dim, action_dim, *, use_bf16=True):
    """Zero-pad hidden dims to lane multiples, split W2 into (h1, a) parts, and
    optionally store the MXU weights in bf16 (f32 biases / final layer)."""
    w1, b1, w2, b2, w3, b3 = raw_params
    wdt = jnp.bfloat16 if use_bf16 else jnp.float32

    w1p = jnp.zeros((obs_dim, H1P), jnp.float32).at[:, :H1].set(w1).astype(wdt)
    b1p = jnp.zeros((1, H1P), jnp.float32).at[:, :H1].set(b1.reshape(1, H1))
    w2xp = jnp.zeros((H1P, H2P), jnp.float32).at[:H1, :H2].set(w2[:H1]).astype(wdt)
    w2ap = (jnp.zeros((action_dim, H2P), jnp.float32)
            .at[:, :H2].set(w2[H1:]).astype(wdt))
    b2p = jnp.zeros((1, H2P), jnp.float32).at[:, :H2].set(b2.reshape(1, H2))
    w3p = jnp.zeros((1, H2P), jnp.float32).at[:, :H2].set(w3.reshape(1, H2))
    b3p = b3.reshape(1, 1).astype(jnp.float32)
    return (w1p, b1p, w2xp, w2ap, b2p, w3p, b3p)


def critic_reference(x, a, raw_params):
    """Pure-JAX reference of the PyTorch forward (for sanity check)."""
    w1, b1, w2, b2, w3, b3 = raw_params
    h1 = jax.nn.relu(x @ w1 + b1)
    xa = jnp.concatenate([h1, a], axis=1)
    h2 = jax.nn.relu(xa @ w2 + b2)
    return h2 @ w3 + b3


if __name__ == "__main__":
    obs_dim, action_dim = 16, 4
    key = jax.random.PRNGKey(0)
    kx, ka, kp = jax.random.split(key, 3)

    raw = init_critic_params(kp, obs_dim, action_dim)
    packed_f32 = pack_params_for_kernel(raw, obs_dim, action_dim, use_bf16=False)
    packed_bf16 = pack_params_for_kernel(raw, obs_dim, action_dim, use_bf16=True)

    # small-shape check (B=2, single tiny tile), exact f32 path
    x = jax.random.normal(kx, (2, obs_dim), jnp.float32)
    a = jax.random.normal(ka, (2, action_dim), jnp.float32)
    q = jax.block_until_ready(critic_forward(x, a, packed_f32))
    q_ref = critic_reference(x, a, raw)
    assert q.shape == (2, 1), q.shape
    assert jnp.allclose(q, q_ref, atol=1e-4, rtol=1e-4), (q, q_ref)

    # multi-tile / ragged-tail check (B=300 -> forced 2-tile split), f32 path
    kx2, ka2 = jax.random.split(jax.random.PRNGKey(1), 2)
    x2 = jax.random.normal(kx2, (300, obs_dim), jnp.float32)
    a2 = jax.random.normal(ka2, (300, action_dim), jnp.float32)
    q2 = jax.block_until_ready(critic_forward(x2, a2, packed_f32))
    q2_ref = critic_reference(x2, a2, raw)
    assert q2.shape == (300, 1), q2.shape
    assert jnp.allclose(q2, q2_ref, atol=1e-4, rtol=1e-4)

    # bf16-MXU fast path: same shapes, looser tolerance vs the f32 reference
    q3 = jax.block_until_ready(critic_forward(x2, a2, packed_bf16))
    assert q3.shape == (300, 1), q3.shape
    assert jnp.allclose(q3, q2_ref, atol=5e-2, rtol=5e-2)

    print("KERNEL_OK")
</pallas_src>

<mosaic_0001>
module attributes {stable_mosaic.version = 11 : i64} {
  func.func @_critic_kernel(%arg0: i32, %arg1: memref<8x16xf32, #tpu.memory_space<vmem>>, %arg2: memref<8x4xf32, #tpu.memory_space<vmem>>, %arg3: memref<16x512xf32, #tpu.memory_space<vmem>>, %arg4: memref<1x512xf32, #tpu.memory_space<vmem>>, %arg5: memref<512x384xf32, #tpu.memory_space<vmem>>, %arg6: memref<4x384xf32, #tpu.memory_space<vmem>>, %arg7: memref<1x384xf32, #tpu.memory_space<vmem>>, %arg8: memref<1x384xf32, #tpu.memory_space<vmem>>, %arg9: memref<1x1xf32, #tpu.memory_space<vmem>>, %arg10: memref<1x8xf32, #tpu.memory_space<vmem>>) attributes {dimension_semantics = [#tpu.dimension_semantics<parallel>], iteration_bounds = array<i64: 1>, scalar_prefetch = 0 : i64, scratch_operands = 0 : i64, tpu.core_type = #tpu.core_type<tc>, window_params = [{transform_indices = @transform_0, window_bounds = array<i64: 8, 16>}, {transform_indices = @transform_1, window_bounds = array<i64: 8, 4>}, {pipeline_mode = #tpu.pipeline_mode<synchronous>, transform_indices = @transform_2, window_bounds = array<i64: 16, 512>}, {pipeline_mode = #tpu.pipeline_mode<synchronous>, transform_indices = @transform_3, window_bounds = array<i64: 1, 512>}, {pipeline_mode = #tpu.pipeline_mode<synchronous>, transform_indices = @transform_4, window_bounds = array<i64: 512, 384>}, {pipeline_mode = #tpu.pipeline_mode<synchronous>, transform_indices = @transform_5, window_bounds = array<i64: 4, 384>}, {pipeline_mode = #tpu.pipeline_mode<synchronous>, transform_indices = @transform_6, window_bounds = array<i64: 1, 384>}, {pipeline_mode = #tpu.pipeline_mode<synchronous>, transform_indices = @transform_7, window_bounds = array<i64: 1, 384>}, {pipeline_mode = #tpu.pipeline_mode<synchronous>, transform_indices = @transform_8, window_bounds = array<i64: 1, 1>}, {transform_indices = @transform_9, window_bounds = array<i64: 1, 8>}]} {
    %c0 = arith.constant 0 : index
    %c0_0 = arith.constant 0 : index
    %0 = vector.load %arg1[%c0, %c0_0] : memref<8x16xf32, #tpu.memory_space<vmem>>, vector<8x16xf32>
    %c0_1 = arith.constant 0 : index
    %c0_2 = arith.constant 0 : index
    %1 = vector.load %arg3[%c0_1, %c0_2] : memref<16x512xf32, #tpu.memory_space<vmem>>, vector<16x512xf32>
    %cst = arith.constant dense<0.000000e+00> : vector<8x512xf32>
    %2 = tpu.matmul %0, %1, %cst {dimension_numbers = #tpu.dot_dimension_numbers<[1], [0], [0], [1], [0, 0, 1, 1], [], []>} : vector<8x16xf32>, vector<16x512xf32>, vector<8x512xf32> -> vector<8x512xf32>
    %c0_3 = arith.constant 0 : index
    %c0_4 = arith.constant 0 : index
    %3 = vector.load %arg4[%c0_3, %c0_4] : memref<1x512xf32, #tpu.memory_space<vmem>>, vector<1x512xf32>
    %4 = vector.broadcast %3 : vector<1x512xf32> to vector<8x512xf32>
    %5 = arith.addf %2, %4 : vector<8x512xf32>
    %cst_5 = arith.constant 0.000000e+00 : f32
    %6 = vector.broadcast %cst_5 : f32 to vector<8x512xf32>
    %7 = arith.maximumf %5, %6 : vector<8x512xf32>
    %c0_6 = arith.constant 0 : index
    %c0_7 = arith.constant 0 : index
    %8 = vector.load %arg5[%c0_6, %c0_7] : memref<512x384xf32, #tpu.memory_space<vmem>>, vector<512x384xf32>
    %cst_8 = arith.constant dense<0.000000e+00> : vector<8x384xf32>
    %9 = tpu.matmul %7, %8, %cst_8 {dimension_numbers = #tpu.dot_dimension_numbers<[1], [0], [0], [1], [0, 0, 1, 1], [], []>} : vector<8x512xf32>, vector<512x384xf32>, vector<8x384xf32> -> vector<8x384xf32>
    %c0_9 = arith.constant 0 : index
    %c0_10 = arith.constant 0 : index
    %10 = vector.load %arg2[%c0_9, %c0_10] : memref<8x4xf32, #tpu.memory_space<vmem>>, vector<8x4xf32>
    %c0_11 = arith.constant 0 : index
    %c0_12 = arith.constant 0 : index
    %11 = vector.load %arg6[%c0_11, %c0_12] : memref<4x384xf32, #tpu.memory_space<vmem>>, vector<4x384xf32>
    %cst_13 = arith.constant dense<0.000000e+00> : vector<8x384xf32>
    %12 = tpu.matmul %10, %11, %cst_13 {dimension_numbers = #tpu.dot_dimension_numbers<[1], [0], [0], [1], [0, 0, 1, 1], [], []>} : vector<8x4xf32>, vector<4x384xf32>, vector<8x384xf32> -> vector<8x384xf32>
    %13 = arith.addf %9, %12 : vector<8x384xf32>
    %c0_14 = arith.constant 0 : index
    %c0_15 = arith.constant 0 : index
    %14 = vector.load %arg7[%c0_14, %c0_15] : memref<1x384xf32, #tpu.memory_space<vmem>>, vector<1x384xf32>
    %15 = vector.broadcast %14 : vector<1x384xf32> to vector<8x384xf32>
    %16 = arith.addf %13, %15 : vector<8x384xf32>
    %cst_16 = arith.constant 0.000000e+00 : f32
    %17 = vector.broadcast %cst_16 : f32 to vector<8x384xf32>
    %18 = arith.maximumf %16, %17 : vector<8x384xf32>
    %c0_17 = arith.constant 0 : index
    %c0_18 = arith.constant 0 : index
    %19 = vector.load %arg8[%c0_17, %c0_18] : memref<1x384xf32, #tpu.memory_space<vmem>>, vector<1x384xf32>
    %cst_19 = arith.constant dense<0.000000e+00> : vector<1x8xf32>
    %20 = tpu.matmul %19, %18, %cst_19 {dimension_numbers = #tpu.dot_dimension_numbers<[1], [1], [0], [0], [0, 0, 1, 0], [], []>} : vector<1x384xf32>, vector<8x384xf32>, vector<1x8xf32> -> vector<1x8xf32>
    %c0_20 = arith.constant 0 : index
    %c0_21 = arith.constant 0 : index
    %21 = vector.load %arg9[%c0_20, %c0_21] : memref<1x1xf32, #tpu.memory_space<vmem>>, vector<1x1xf32>
    %22 = vector.broadcast %21 : vector<1x1xf32> to vector<1x8xf32>
    %23 = arith.addf %20, %22 : vector<1x8xf32>
    %c0_22 = arith.constant 0 : index
    %c0_23 = arith.constant 0 : index
    %24 = vector.load %arg10[%c0_22, %c0_23] : memref<1x8xf32, #tpu.memory_space<vmem>>, vector<1x8xf32>
    tpu.vector_store %arg10[%c0_22, %c0_23], %23 {strides = array<i32>} : memref<1x8xf32, #tpu.memory_space<vmem>>, vector<1x8xf32>,
    return
  }
  func.func @transform_0(%arg0: i32) -> (i32, i32) {
    %c0_i32 = arith.constant 0 : i32
    %c0_i32_0 = arith.constant 0 : i32
    return %arg0, %c0_i32 : i32, i32
  }
  func.func @transform_1(%arg0: i32) -> (i32, i32) {
    %c0_i32 = arith.constant 0 : i32
    %c0_i32_0 = arith.constant 0 : i32
    return %arg0, %c0_i32 : i32, i32
  }
  func.func @transform_2(%arg0: i32) -> (i32, i32) {
    %c0_i32 = arith.constant 0 : i32
    %c0_i32_0 = arith.constant 0 : i32
    %c0_i32_1 = arith.constant 0 : i32
    return %c0_i32, %c0_i32_0 : i32, i32
  }
  func.func @transform_3(%arg0: i32) -> (i32, i32) {
    %c0_i32 = arith.constant 0 : i32
    %c0_i32_0 = arith.constant 0 : i32
    %c0_i32_1 = arith.constant 0 : i32
    return %c0_i32, %c0_i32_0 : i32, i32
  }
  func.func @transform_4(%arg0: i32) -> (i32, i32) {
    %c0_i32 = arith.constant 0 : i32
    %c0_i32_0 = arith.constant 0 : i32
    %c0_i32_1 = arith.constant 0 : i32
    return %c0_i32, %c0_i32_0 : i32, i32
  }
  func.func @transform_5(%arg0: i32) -> (i32, i32) {
    %c0_i32 = arith.constant 0 : i32
    %c0_i32_0 = arith.constant 0 : i32
    %c0_i32_1 = arith.constant 0 : i32
    return %c0_i32, %c0_i32_0 : i32, i32
  }
  func.func @transform_6(%arg0: i32) -> (i32, i32) {
    %c0_i32 = arith.constant 0 : i32
    %c0_i32_0 = arith.constant 0 : i32
    %c0_i32_1 = arith.constant 0 : i32
    return %c0_i32, %c0_i32_0 : i32, i32
  }
  func.func @transform_7(%arg0: i32) -> (i32, i32) {
    %c0_i32 = arith.constant 0 : i32
    %c0_i32_0 = arith.constant 0 : i32
    %c0_i32_1 = arith.constant 0 : i32
    return %c0_i32, %c0_i32_0 : i32, i32
  }
  func.func @transform_8(%arg0: i32) -> (i32, i32) {
    %c0_i32 = arith.constant 0 : i32
    %c0_i32_0 = arith.constant 0 : i32
    %c0_i32_1 = arith.constant 0 : i32
    return %c0_i32, %c0_i32_0 : i32, i32
  }
  func.func @transform_9(%arg0: i32) -> (i32, i32) {
    %c0_i32 = arith.constant 0 : i32
    %c0_i32_0 = arith.constant 0 : i32
    return %arg0, %c0_i32 : i32, i32
  }
}

</mosaic_0001>

<bundles_post_ra>
// kernel: tpu_custom_call.1
= control target key start
LH: loop header
LB: loop body
LE: loop exit
PB: predicated region body
PF: predicated region fallthrough
CT: control target
= control target key end

     0   :  { %s1421_s0 = inlined_call_operand.vmem [shape: f32[8,16], index: 0, kind: input, shape index: {}]   ;;  %s1422_s1 = inlined_call_operand.vmem [shape: f32[8,4], index: 1, kind: input, shape index: {}]   ;;  %s1423_s2 = inlined_call_operand.hbm [shape: f32[16,512], index: 2, kind: input, shape index: {}]   ;;  %s1424_s3 = inlined_call_operand.hbm [shape: f32[1,512], index: 3, kind: input, shape index: {}]   ;;  %s1425_s4 = inlined_call_operand.hbm [shape: f32[512,384], index: 4, kind: input, shape index: {}]   ;;  %s1426_s5 = inlined_call_operand.vmem [shape: f32[4,384], index: 5, kind: input, shape index: {}]   ;;  %s1427_s6 = inlined_call_operand.vmem [shape: f32[1,384], index: 6, kind: input, shape index: {}]   ;;  %s1428_s7 = inlined_call_operand.vmem [shape: f32[1,384], index: 7, kind: input, shape index: {}]   ;;  %s1429_s8 = inlined_call_operand.<no memory space> [shape: f32[1,1], index: 8, kind: input, shape index: {}]   ;;  %s1430_s9 = inlined_call_operand.hbm [shape: f32[1,8], index: 9, kind: output, shape index: {}]  }
   0x1   :  { %v14_v0 = vstv %s1429_s8 }
   0x2   :  { %15 = vst [vmem:[#allocation2] sm:$0x1] %v14_v0 }
   0x3   :  { %16 = vsyncpa [#allocation4], 0 }
   0x4   :  { %17 = vsyncpa [#allocation7], 0 }
   0x5   :  { %18 = vsyncpa [#allocation5], 0  ;;  %s1285_s11 = smov [#allocation6]   ;;  %s1286_s13 = smov [#allocation3]  }
   0x6   :  { %s41_s12 = sshll.u32 %s1285_s11, 4  ;;  %s28_s14 = sshll.u32 %s1286_s13, 4  ;;  %s42_s12 = int_to_ptr.vmem [resolvable:$true] %s41_s12  ;;  %s29_s14 = int_to_ptr.vmem [resolvable:$true] %s28_s14 }
   0x7   :  { %s1207_s15 = scalar_lea.vmem %s42_s12, 64  ;;  %p1212_p1 = scmp.lt.s32.totalorder %s42_s12, %s42_s12 }
   0x8   :  { %p1208_p0 = scmp.ne.s32.totalorder %s42_s12, %s1207_s15  ;;  %p1213_p2 = scmp.lt.s32.totalorder %s1207_s15, %s1207_s15 }
   0xa   :  { %p1214_p3 = por %p1213_p2, %p1212_p1 }
   0xc   :  { %p1215_p4 = pnand %p1214_p3, %p1208_p0 }
   0xe   :  { %1218 = shalt.err (!%p1215_p4)
}
   0xf   :  { %44 = dma.hbm_to_vmem [thread:$0]  %s1424_s3, 64, %s42_s12, [#allocation7]  }
  0x10   :  { %s1227_s8 = scalar_lea.vmem %s29_s14, 1024  ;;  %p1232_p6 = scmp.lt.s32.totalorder %s29_s14, %s29_s14 }
  0x11   :  { %p1228_p5 = scmp.ne.s32.totalorder %s29_s14, %s1227_s8  ;;  %p1233_p7 = scmp.lt.s32.totalorder %s1227_s8, %s1227_s8 }
  0x13   :  { %p1234_p8 = por %p1233_p7, %p1232_p6 }
  0x15   :  { %p1235_p9 = pnand %p1234_p8, %p1228_p5 }
  0x17   :  { %1238 = shalt.err (!%p1235_p9)
}
  0x18   :  { %s1287_s18 = smov 512   ;;  %s1288_s19 = smov 32  }
  0x19   :  { %34 = dma.hbm_to_vmem [thread:$0]  %s1423_s2, 1024, %s29_s14, [#allocation4], %s1287_s18, %s1287_s18, %s1288_s19  }
  0x1a   :  { %s1289_s22 = smov [#allocation8]  }
  0x1b   :  { %s50_s23 = sshll.u32 %s1289_s22, 4  ;;  %s51_s23 = int_to_ptr.vmem [resolvable:$true] %s50_s23 }
  0x1c   :  { %s1247_s24 = scalar_lea.vmem %s51_s23, 24576  ;;  %p1252_p11 = scmp.lt.s32.totalorder %s51_s23, %s51_s23 }
  0x1d   :  { %p1248_p10 = scmp.ne.s32.totalorder %s51_s23, %s1247_s24  ;;  %p1253_p12 = scmp.lt.s32.totalorder %s1247_s24, %s1247_s24 }
  0x1f   :  { %p1254_p13 = por %p1253_p12, %p1252_p11 }
  0x21   :  { %p1255_p0 = pnand %p1254_p13, %p1248_p10 }
  0x23   :  { %1258 = shalt.err (!%p1255_p0)
}
  0x24   :  { %s1290_s3 = smov 384   ;;  %s1291_s25 = smov 24  }
  0x25   :  { %56 = dma.hbm_to_vmem [thread:$0]  %s1425_s4, 24576, %s51_s23, [#allocation7], %s1290_s3, %s1290_s3, %s1291_s25  }
  0x26   :  { %1279 = dma.done.wait [#allocation4], 1024  }
  0x27   :  { %1280 = vsyncadd [#allocation4], 4294966272 }
  0x28   :  { %1281 = dma.done.wait [#allocation7], 24640  }
  0x29   :  { %1282 = vsyncadd [#allocation7], 4294942656  ;;  %v1292_v1 = vmov 0.0   ;;  %v80_v2 = vld [vmem:[#allocation3 + $0x28] sm:$0xff]  ;;  %v82_v3 = vld [vmem:[#allocation3 + $0x38] sm:$0xff]  ;;  %vm105_vm0 = vcmask 130048  }
  0x2a   :  { %173 = vmatprep.mubr.f32.mxu0 %v1292_v1  ;;  %244 = vmatprep.mubr.f32.mxu1 %v1292_v1  ;;  %v79_v4 = vld [vmem:[#allocation3 + $0x20] sm:$0xff]  ;;  %v81_v5 = vld [vmem:[#allocation3 + $0x30] sm:$0xff]  ;;  %v76_v6 = vld [vmem:[#allocation3 + $0x8] sm:$0xff]  ;;  %vm457_vm1 = vcmask 1043456   ;;  %vm453_vm2 = vcmask 31744   ;;  %vm1293_vm3 = vmmov 0  }
  0x2b   :  { %137 = vmatprep.subr.mxu0 %v80_v2  ;;  %208 = vmatprep.subr.mxu1 %v82_v3  ;;  %v78_v7 = vld [vmem:[#allocation3 + $0x18] sm:$0xff]  ;;  %v75_v8 = vld [vmem:[#allocation3] sm:$0xff]  ;;  %v77_v9 = vld [vmem:[#allocation3 + $0x10] sm:$0xff]  ;;  %vm1077_vm4 = vcmask 57344  }
  0x2c   :  { %138 = vmatpush1.msra.mxu0 %v79_v4  ;;  %209 = vmatpush1.msra.mxu1 %v81_v5  ;;  %v74_v10 = vld [vmem:[%s1421_s0] sm:$0xff]  ;;  %v449_v13 = vld [vmem:[%s1426_s5 + $0x8] sm:$0xf]  ;;  %v301_v15 = vld [vmem:[#allocation8 + $0x170] sm:$0xff] }
  0x2d   :  { %139 = vmatprep.subr.mxu0 %v76_v6  ;;  %210 = vmatprep.subr.mxu1 %v78_v7  ;;  %v448_v11 = vld [vmem:[%s1426_s5] sm:$0xff]  ;;  %v397_v16 = vld [vmem:[#allocation8 + $0x470] sm:$0xff]  ;;  %v300_v17 = vld [vmem:[#allocation8 + $0x168] sm:$0xff] }
  0x2e   :  { %140 = vmatpush1.msra.mxu0 %v75_v8  ;;  %211 = vmatpush1.msra.mxu1 %v77_v9  ;;  %v452_v12 = vcombine.high %v448_v11, %v448_v11  ;;  %v447_v14 = vld [vmem:[%s1422_s1] sm:$0xff]  ;;  %v396_v18 = vld [vmem:[#allocation8 + $0x468] sm:$0xff]  ;;  %v297_v21 = vld [vmem:[#allocation8 + $0x150] sm:$0xff] }
  0x2f   :  { %1095 = vmatmul.mubr.msk.f32.vlgmr.msra.gmra.mxu0 %vm105_vm0, %v74_v10  ;;  %1096 = vmatmul.mubr.msk.f32.vlgmr.msra.gmra.mxu1 %vm105_vm0, %v74_v10  ;;  %v298_v19 = vld [vmem:[#allocation8 + $0x158] sm:$0xff]  ;;  %v393_v22 = vld [vmem:[#allocation8 + $0x450] sm:$0xff]  ;;  %v295_v23 = vld [vmem:[#allocation8 + $0x140] sm:$0xff] }
  0x30   :  { %1097 = vmatprep.subr.msk.mxu0 %vm457_vm1, %v452_v12  ;;  %528 = vmatprep.mubr.f32.mxu0 %v1292_v1  ;;  %v394_v20 = vld [vmem:[#allocation8 + $0x458] sm:$0xff]  ;;  %v391_v24 = vld [vmem:[#allocation8 + $0x440] sm:$0xff]  ;;  %v292_v27 = vld [vmem:[#allocation8 + $0x128] sm:$0xff] }
  0x31   :  { %1098 = vmatpush1.msk.msra.mxu0 %vm457_vm1, %v448_v11  ;;  %1176 = vmatprep.subr.mxu1 %v1292_v1  ;;  %v294_v25 = vld [vmem:[#allocation8 + $0x138] sm:$0xff]  ;;  %v388_v28 = vld [vmem:[#allocation8 + $0x428] sm:$0xff]  ;;  %v291_v29 = vld [vmem:[#allocation8 + $0x120] sm:$0xff] }
  0x32   :  { %1177 = vmatpush3.msk.msra.mxu1 %vm457_vm1, %v449_v13  ;;  %1178 = vmatprep.mubr.msk.f32.mxu1 %vm1293_vm3, %v1292_v1  ;;  %v390_v26 = vld [vmem:[#allocation8 + $0x438] sm:$0xff]  ;;  %v387_v30 = vld [vmem:[#allocation8 + $0x420] sm:$0xff]  ;;  %v289_v31 = vld [vmem:[#allocation8 + $0x110] sm:$0xff] }
  0x33   :  { %1099 = vmatmul.mubr.msk.f32.vlgmr.msra.gmra.mxu0 %vm453_vm2, %v447_v14  ;;  %605 = vmatprep.subr.mxu0 %v301_v15  ;;  %v385_v32 = vld [vmem:[#allocation8 + $0x410] sm:$0xff]  ;;  %v288_v33 = vld [vmem:[#allocation8 + $0x108] sm:$0xff]  ;;  %v286_v35 = vld [vmem:[#allocation8 + $0xf8] sm:$0xff] }
  0x34   :  { %676 = vmatprep.subr.mxu1 %v397_v16  ;;  %1179 = vmatmul.mubr.msk.f32.vlgmr.msra.gmra.mxu1 %vm453_vm2, %v447_v14  ;;  %v384_v34 = vld [vmem:[#allocation8 + $0x408] sm:$0xff]  ;;  %v382_v36 = vld [vmem:[#allocation8 + $0x3f8] sm:$0xff]  ;;  %v285_v37 = vld [vmem:[#allocation8 + $0xf0] sm:$0xff] }
  0x35   :  { %606 = vmatpush1.msra.mxu0 %v300_v17  ;;  %677 = vmatpush1.msra.mxu1 %v396_v18  ;;  %v381_v38 = vld [vmem:[#allocation8 + $0x3f0] sm:$0xff]  ;;  %v283_v39 = vld [vmem:[#allocation8 + $0xe0] sm:$0xff]  ;;  %v282_v41 = vld [vmem:[#allocation8 + $0xd8] sm:$0xff] }
  0x36   :  { %607 = vmatprep.subr.mxu0 %v298_v19  ;;  %678 = vmatprep.subr.mxu1 %v394_v20  ;;  %v379_v40 = vld [vmem:[#allocation8 + $0x3e0] sm:$0xff]  ;;  %v378_v42 = vld [vmem:[#allocation8 + $0x3d8] sm:$0xff]  ;;  %v280_v43 = vld [vmem:[#allocation8 + $0xc8] sm:$0xff] }
  0x37   :  { %608 = vmatpush1.msra.mxu0 %v297_v21  ;;  %679 = vmatpush1.msra.mxu1 %v393_v22  ;;  %v376_v44 = vld [vmem:[#allocation8 + $0x3c8] sm:$0xff]  ;;  %v279_v45 = vld [vmem:[#allocation8 + $0xc0] sm:$0xff]  ;;  %v277_v47 = vld [vmem:[#allocation8 + $0xb0] sm:$0xff] }
  0x38   :  { %609 = vmatprep.subr.mxu0 %v295_v23  ;;  %680 = vmatprep.subr.mxu1 %v391_v24  ;;  %v375_v46 = vld [vmem:[#allocation8 + $0x3c0] sm:$0xff]  ;;  %v373_v48 = vld [vmem:[#allocation8 + $0x3b0] sm:$0xff]  ;;  %v276_v49 = vld [vmem:[#allocation8 + $0xa8] sm:$0xff] }
  0x39   :  { %610 = vmatpush1.msra.mxu0 %v294_v25  ;;  %681 = vmatpush1.msra.mxu1 %v390_v26  ;;  %v372_v50 = vld [vmem:[#allocation8 + $0x3a8] sm:$0xff]  ;;  %v274_v51 = vld [vmem:[#allocation8 + $0x98] sm:$0xff]  ;;  %v273_v53 = vld [vmem:[#allocation8 + $0x90] sm:$0xff] }
  0x3a   :  { %611 = vmatprep.subr.mxu0 %v292_v27  ;;  %682 = vmatprep.subr.mxu1 %v388_v28  ;;  %v370_v52 = vld [vmem:[#allocation8 + $0x398] sm:$0xff]  ;;  %v369_v54 = vld [vmem:[#allocation8 + $0x390] sm:$0xff]  ;;  %v271_v55 = vld [vmem:[#allocation8 + $0x80] sm:$0xff] }
  0x3b   :  { %612 = vmatpush1.msra.mxu0 %v291_v29  ;;  %683 = vmatpush1.msra.mxu1 %v387_v30  ;;  %v367_v56 = vld [vmem:[#allocation8 + $0x380] sm:$0xff]  ;;  %v270_v57 = vld [vmem:[#allocation8 + $0x78] sm:$0xff]  ;;  %v268_v59 = vld [vmem:[#allocation8 + $0x68] sm:$0xff] }
  0x3c   :  { %613 = vmatprep.subr.mxu0 %v289_v31  ;;  %684 = vmatprep.subr.mxu1 %v385_v32  ;;  %v366_v58 = vld [vmem:[#allocation8 + $0x378] sm:$0xff]  ;;  %v364_v60 = vld [vmem:[#allocation8 + $0x368] sm:$0xff]  ;;  %v267_v61 = vld [vmem:[#allocation8 + $0x60] sm:$0xff] }
  0x3d   :  { %614 = vmatpush1.msra.mxu0 %v288_v33  ;;  %685 = vmatpush1.msra.mxu1 %v384_v34  ;;  %v363_v62 = vld [vmem:[#allocation8 + $0x360] sm:$0xff]  ;;  %v265_v63 = vld [vmem:[#allocation8 + $0x50] sm:$0xff]  ;;  %v264_v2 = vld [vmem:[#allocation8 + $0x48] sm:$0xff] }
  0x3e   :  { %615 = vmatprep.subr.mxu0 %v286_v35  ;;  %686 = vmatprep.subr.mxu1 %v382_v36  ;;  %v361_v0 = vld [vmem:[#allocation8 + $0x350] sm:$0xff]  ;;  %v360_v3 = vld [vmem:[#allocation8 + $0x348] sm:$0xff]  ;;  %v262_v4 = vld [vmem:[#allocation8 + $0x38] sm:$0xff] }
  0x3f   :  { %616 = vmatpush1.msra.mxu0 %v285_v37  ;;  %687 = vmatpush1.msra.mxu1 %v381_v38  ;;  %v358_v5 = vld [vmem:[#allocation8 + $0x338] sm:$0xff]  ;;  %v261_v6 = vld [vmem:[#allocation8 + $0x30] sm:$0xff]  ;;  %v259_v8 = vld [vmem:[#allocation8 + $0x20] sm:$0xff] }
  0x40   :  { %617 = vmatprep.subr.mxu0 %v283_v39  ;;  %688 = vmatprep.subr.mxu1 %v379_v40  ;;  %v357_v7 = vld [vmem:[#allocation8 + $0x330] sm:$0xff]  ;;  %v355_v9 = vld [vmem:[#allocation8 + $0x320] sm:$0xff]  ;;  %v258_v10 = vld [vmem:[#allocation8 + $0x18] sm:$0xff] }
  0x41   :  { %618 = vmatpush1.msra.mxu0 %v282_v41  ;;  %689 = vmatpush1.msra.mxu1 %v378_v42  ;;  %v354_v11 = vld [vmem:[#allocation8 + $0x318] sm:$0xff]  ;;  %v256_v12 = vld [vmem:[#allocation8 + $0x8] sm:$0xff]  ;;  %v255_v14 = vld [vmem:[#allocation8] sm:$0xff] }
  0x42   :  { %619 = vmatprep.subr.mxu0 %v280_v43  ;;  %690 = vmatprep.subr.mxu1 %v376_v44  ;;  %v352_v13 = vld [vmem:[#allocation8 + $0x308] sm:$0xff]  ;;  %v351_v15 = vld [vmem:[#allocation8 + $0x300] sm:$0xff]  ;;  %v349_v16 = vld [vmem:[#allocation8 + $0x2f0] sm:$0xff] }
  0x43   :  { %620 = vmatpush1.msra.mxu0 %v279_v45  ;;  %691 = vmatpush1.msra.mxu1 %v375_v46  ;;  %v445_v17 = vld [vmem:[#allocation8 + $0x5f0] sm:$0xff]  ;;  %v348_v18 = vld [vmem:[#allocation8 + $0x2e8] sm:$0xff]  ;;  %v346_v20 = vld [vmem:[#allocation8 + $0x2d8] sm:$0xff] }
  0x44   :  { %621 = vmatprep.subr.mxu0 %v277_v47  ;;  %692 = vmatprep.subr.mxu1 %v373_v48  ;;  %v444_v19 = vld [vmem:[#allocation8 + $0x5e8] sm:$0xff]  ;;  %v442_v21 = vld [vmem:[#allocation8 + $0x5d8] sm:$0xff]  ;;  %v345_v22 = vld [vmem:[#allocation8 + $0x2d0] sm:$0xff] }
  0x45   :  { %622 = vmatpush1.msra.mxu0 %v276_v49  ;;  %693 = vmatpush1.msra.mxu1 %v372_v50  ;;  %v441_v23 = vld [vmem:[#allocation8 + $0x5d0] sm:$0xff]  ;;  %v343_v24 = vld [vmem:[#allocation8 + $0x2c0] sm:$0xff]  ;;  %v342_v26 = vld [vmem:[#allocation8 + $0x2b8] sm:$0xff] }
  0x46   :  { %623 = vmatprep.subr.mxu0 %v274_v51  ;;  %694 = vmatprep.subr.mxu1 %v370_v52  ;;  %v439_v25 = vld [vmem:[#allocation8 + $0x5c0] sm:$0xff]  ;;  %v438_v27 = vld [vmem:[#allocation8 + $0x5b8] sm:$0xff]  ;;  %v340_v28 = vld [vmem:[#allocation8 + $0x2a8] sm:$0xff] }
  0x47   :  { %624 = vmatpush1.msra.mxu0 %v273_v53  ;;  %695 = vmatpush1.msra.mxu1 %v369_v54  ;;  %v436_v29 = vld [vmem:[#allocation8 + $0x5a8] sm:$0xff]  ;;  %v339_v30 = vld [vmem:[#allocation8 + $0x2a0] sm:$0xff]  ;;  %v337_v32 = vld [vmem:[#allocation8 + $0x290] sm:$0xff] }
  0x48   :  { %625 = vmatprep.subr.mxu0 %v271_v55  ;;  %696 = vmatprep.subr.mxu1 %v367_v56  ;;  %v435_v31 = vld [vmem:[#allocation8 + $0x5a0] sm:$0xff]  ;;  %v433_v33 = vld [vmem:[#allocation8 + $0x590] sm:$0xff]  ;;  %v336_v34 = vld [vmem:[#allocation8 + $0x288] sm:$0xff] }
  0x49   :  { %626 = vmatpush1.msra.mxu0 %v270_v57  ;;  %697 = vmatpush1.msra.mxu1 %v366_v58  ;;  %v432_v35 = vld [vmem:[#allocation8 + $0x588] sm:$0xff]  ;;  %v334_v36 = vld [vmem:[#allocation8 + $0x278] sm:$0xff]  ;;  %v333_v38 = vld [vmem:[#allocation8 + $0x270] sm:$0xff] }
  0x4a   :  { %627 = vmatprep.subr.mxu0 %v268_v59  ;;  %698 = vmatprep.subr.mxu1 %v364_v60  ;;  %v430_v37 = vld [vmem:[#allocation8 + $0x578] sm:$0xff]  ;;  %v429_v39 = vld [vmem:[#allocation8 + $0x570] sm:$0xff]  ;;  %v331_v40 = vld [vmem:[#allocation8 + $0x260] sm:$0xff] }
  0x4b   :  { %628 = vmatpush1.msra.mxu0 %v267_v61  ;;  %699 = vmatpush1.msra.mxu1 %v363_v62  ;;  %v427_v41 = vld [vmem:[#allocation8 + $0x560] sm:$0xff]  ;;  %v330_v42 = vld [vmem:[#allocation8 + $0x258] sm:$0xff]  ;;  %v328_v44 = vld [vmem:[#allocation8 + $0x248] sm:$0xff] }
  0x4c   :  { %629 = vmatprep.subr.mxu0 %v265_v63  ;;  %700 = vmatprep.subr.mxu1 %v361_v0  ;;  %v426_v43 = vld [vmem:[#allocation8 + $0x558] sm:$0xff]  ;;  %v424_v45 = vld [vmem:[#allocation8 + $0x548] sm:$0xff]  ;;  %v327_v46 = vld [vmem:[#allocation8 + $0x240] sm:$0xff] }
  0x4d   :  { %630 = vmatpush1.msra.mxu0 %v264_v2  ;;  %701 = vmatpush1.msra.mxu1 %v360_v3  ;;  %v423_v47 = vld [vmem:[#allocation8 + $0x540] sm:$0xff]  ;;  %v325_v48 = vld [vmem:[#allocation8 + $0x230] sm:$0xff]  ;;  %v324_v50 = vld [vmem:[#allocation8 + $0x228] sm:$0xff] }
  0x4e   :  { %631 = vmatprep.subr.mxu0 %v262_v4  ;;  %702 = vmatprep.subr.mxu1 %v358_v5  ;;  %v421_v49 = vld [vmem:[#allocation8 + $0x530] sm:$0xff]  ;;  %v420_v51 = vld [vmem:[#allocation8 + $0x528] sm:$0xff]  ;;  %v322_v52 = vld [vmem:[#allocation8 + $0x218] sm:$0xff] }
  0x4f   :  { %632 = vmatpush1.msra.mxu0 %v261_v6  ;;  %703 = vmatpush1.msra.mxu1 %v357_v7  ;;  %v418_v53 = vld [vmem:[#allocation8 + $0x518] sm:$0xff]  ;;  %v321_v54 = vld [vmem:[#allocation8 + $0x210] sm:$0xff]  ;;  %v319_v56 = vld [vmem:[#allocation8 + $0x200] sm:$0xff] }
  0x50   :  { %633 = vmatprep.subr.mxu0 %v259_v8  ;;  %704 = vmatprep.subr.mxu1 %v355_v9  ;;  %v417_v55 = vld [vmem:[#allocation8 + $0x510] sm:$0xff]  ;;  %v415_v57 = vld [vmem:[#allocation8 + $0x500] sm:$0xff]  ;;  %v318_v58 = vld [vmem:[#allocation8 + $0x1f8] sm:$0xff] }
  0x51   :  { %634 = vmatpush1.msra.mxu0 %v258_v10  ;;  %705 = vmatpush1.msra.mxu1 %v354_v11  ;;  %v414_v59 = vld [vmem:[#allocation8 + $0x4f8] sm:$0xff]  ;;  %v316_v60 = vld [vmem:[#allocation8 + $0x1e8] sm:$0xff]  ;;  %v315_v62 = vld [vmem:[#allocation8 + $0x1e0] sm:$0xff] }
  0x52   :  { %635 = vmatprep.subr.mxu0 %v256_v12  ;;  %706 = vmatprep.subr.mxu1 %v352_v13  ;;  %v412_v61 = vld [vmem:[#allocation8 + $0x4e8] sm:$0xff]  ;;  %v411_v63 = vld [vmem:[#allocation8 + $0x4e0] sm:$0xff]  ;;  %v313_v0 = vld [vmem:[#allocation8 + $0x1d0] sm:$0xff] }
  0x53   :  { %636 = vmatpush1.msra.mxu0 %v255_v14  ;;  %707 = vmatpush1.msra.mxu1 %v351_v15  ;;  %v409_v2 = vld [vmem:[#allocation8 + $0x4d0] sm:$0xff]  ;;  %v312_v3 = vld [vmem:[#allocation8 + $0x1c8] sm:$0xff]  ;;  %v310_v5 = vld [vmem:[#allocation8 + $0x1b8] sm:$0xff] }
  0x54   :  { %637 = vmatprep.subr.mxu0 %v349_v16  ;;  %708 = vmatprep.subr.mxu1 %v445_v17  ;;  %v408_v4 = vld [vmem:[#allocation8 + $0x4c8] sm:$0xff]  ;;  %v406_v6 = vld [vmem:[#allocation8 + $0x4b8] sm:$0xff]  ;;  %v309_v7 = vld [vmem:[#allocation8 + $0x1b0] sm:$0xff] }
  0x55   :  { %638 = vmatpush2.msra.mxu0 %v348_v18  ;;  %709 = vmatpush2.msra.mxu1 %v444_v19  ;;  %v405_v8 = vld [vmem:[#allocation8 + $0x4b0] sm:$0xff]  ;;  %v307_v9 = vld [vmem:[#allocation8 + $0x1a0] sm:$0xff]  ;;  %v306_v11 = vld [vmem:[#allocation8 + $0x198] sm:$0xff]  ;;  %v85_v19 = vlaneseq }
  0x56   :  { %639 = vmatprep.subr.mxu0 %v346_v20  ;;  %710 = vmatprep.subr.mxu1 %v442_v21  ;;  %v403_v10 = vld [vmem:[#allocation8 + $0x4a0] sm:$0xff]  ;;  %v402_v12 = vld [vmem:[#allocation8 + $0x498] sm:$0xff]  ;;  %v304_v13 = vld [vmem:[#allocation8 + $0x188] sm:$0xff] }
  0x57   :  { %640 = vmatpush2.msra.mxu0 %v345_v22  ;;  %711 = vmatpush2.msra.mxu1 %v441_v23  ;;  %v400_v14 = vld [vmem:[#allocation8 + $0x488] sm:$0xff]  ;;  %v303_v15 = vld [vmem:[#allocation8 + $0x180] sm:$0xff]  ;;  %v350_v17 = vld [vmem:[#allocation8 + $0x2f8] sm:$0xff]  ;;  %v86_v20 = vshrl.u32 %v85_v19, 7 }
  0x58   :  { %641 = vmatprep.subr.mxu0 %v343_v24  ;;  %712 = vmatprep.subr.mxu1 %v439_v25  ;;  %v399_v16 = vld [vmem:[#allocation8 + $0x480] sm:$0xff]  ;;  %v446_v18 = vld [vmem:[#allocation8 + $0x5f8] sm:$0xff]  ;;  %v320_v19 = vld [vmem:[#allocation8 + $0x208] sm:$0xff] }
  0x59   :  { %642 = vmatpush2.msra.mxu0 %v342_v26  ;;  %713 = vmatpush2.msra.mxu1 %v438_v27  ;;  %v1376_v21 = vsub.s32 2, %v86_v20  ;;  %v1378_v22 = vsub.s32 0, %v86_v20  ;;  %v83_v23 = vld [vmem:[#allocation6] sm:$0xf]  ;;  %v1380_v24 = vsub.s32 1, %v86_v20  ;;  %v99_v25 = vsub.s32 3, %v86_v20 }
  0x5a   :  { %643 = vmatprep.subr.mxu0 %v340_v28  ;;  %714 = vmatprep.subr.mxu1 %v436_v29  ;;  %v416_v20 = vld [vmem:[#allocation8 + $0x508] sm:$0xff] }
  0x5b   :  { %644 = vmatpush2.msra.mxu0 %v339_v30  ;;  %715 = vmatpush2.msra.mxu1 %v435_v31  ;;  %v96_v26 = vrot.slane %v83_v23, %v1376_v21  ;;  %v88_v27 = vrot.slane %v83_v23, %v1378_v22  ;;  %v92_v28 = vrot.slane %v83_v23, %v1380_v24 }
  0x5c   :  { %645 = vmatprep.subr.mxu0 %v337_v32  ;;  %716 = vmatprep.subr.mxu1 %v433_v33  ;;  %v100_v29 = vrot.slane %v83_v23, %v99_v25  ;;  %v272_v23 = vld [vmem:[#allocation8 + $0x88] sm:$0xff] }
  0x5d   :  { %646 = vmatpush2.msra.mxu0 %v336_v34  ;;  %717 = vmatpush2.msra.mxu1 %v432_v35  ;;  %v368_v25 = vld [vmem:[#allocation8 + $0x388] sm:$0xff] }
  0x5e   :  { %647 = vmatprep.subr.mxu0 %v334_v36  ;;  %718 = vmatprep.subr.mxu1 %v430_v37 }
  0x5f   :  { %648 = vmatpush2.msra.mxu0 %v333_v38  ;;  %719 = vmatpush2.msra.mxu1 %v429_v39 }
  0x60   :  { %649 = vmatprep.subr.mxu0 %v331_v40  ;;  %720 = vmatprep.subr.mxu1 %v427_v41 }
  0x61   :  { %650 = vmatpush2.msra.mxu0 %v330_v42  ;;  %721 = vmatpush2.msra.mxu1 %v426_v43  ;;  %v302_v43 = vld [vmem:[#allocation8 + $0x178] sm:$0xff] }
  0x62   :  { %651 = vmatprep.subr.mxu0 %v328_v44  ;;  %722 = vmatprep.subr.mxu1 %v424_v45  ;;  %v398_v44 = vld [vmem:[#allocation8 + $0x478] sm:$0xff]  ;;  %v347_v45 = vld [vmem:[#allocation8 + $0x2e0] sm:$0xff] }
  0x63   :  { %652 = vmatpush2.msra.mxu0 %v327_v46  ;;  %723 = vmatpush2.msra.mxu1 %v423_v47  ;;  %v443_v47 = vld [vmem:[#allocation8 + $0x5e0] sm:$0xff] }
  0x64   :  { %653 = vmatprep.subr.mxu0 %v325_v48  ;;  %724 = vmatprep.subr.mxu1 %v421_v49  ;;  %v299_v48 = vld [vmem:[#allocation8 + $0x160] sm:$0xff] }
  0x65   :  { %654 = vmatpush2.msra.mxu0 %v324_v50  ;;  %725 = vmatpush2.msra.mxu1 %v420_v51  ;;  %v395_v49 = vld [vmem:[#allocation8 + $0x460] sm:$0xff]  ;;  %v344_v50 = vld [vmem:[#allocation8 + $0x2c8] sm:$0xff] }
  0x66   :  { %655 = vmatprep.subr.mxu0 %v322_v52  ;;  %726 = vmatprep.subr.mxu1 %v418_v53  ;;  %v440_v51 = vld [vmem:[#allocation8 + $0x5c8] sm:$0xff] }
  0x67   :  { %656 = vmatpush2.msra.mxu0 %v321_v54  ;;  %727 = vmatpush2.msra.mxu1 %v417_v55  ;;  %v296_v52 = vld [vmem:[#allocation8 + $0x148] sm:$0xff]  ;;  %v341_v54 = vld [vmem:[#allocation8 + $0x2b0] sm:$0xff] }
  0x68   :  { %657 = vmatprep.subr.mxu0 %v319_v56  ;;  %728 = vmatprep.subr.mxu1 %v415_v57  ;;  %v392_v53 = vld [vmem:[#allocation8 + $0x448] sm:$0xff]  ;;  %v437_v55 = vld [vmem:[#allocation8 + $0x5b0] sm:$0xff] }
  0x69   :  { %658 = vmatpush2.msra.mxu0 %v318_v58  ;;  %729 = vmatpush2.msra.mxu1 %v414_v59  ;;  %v293_v56 = vld [vmem:[#allocation8 + $0x130] sm:$0xff]  ;;  %v338_v58 = vld [vmem:[#allocation8 + $0x298] sm:$0xff] }
  0x6a   :  { %659 = vmatprep.subr.mxu0 %v316_v60  ;;  %730 = vmatprep.subr.mxu1 %v412_v61  ;;  %v389_v57 = vld [vmem:[#allocation8 + $0x430] sm:$0xff]  ;;  %v434_v59 = vld [vmem:[#allocation8 + $0x598] sm:$0xff] }
  0x6b   :  { %660 = vmatpush2.msra.mxu0 %v315_v62  ;;  %731 = vmatpush2.msra.mxu1 %v411_v63  ;;  %v290_v60 = vld [vmem:[#allocation8 + $0x118] sm:$0xff]  ;;  %v335_v62 = vld [vmem:[#allocation8 + $0x280] sm:$0xff] }
  0x6c   :  { %661 = vmatprep.subr.mxu0 %v313_v0  ;;  %732 = vmatprep.subr.mxu1 %v409_v2  ;;  %v386_v61 = vld [vmem:[#allocation8 + $0x418] sm:$0xff]  ;;  %v431_v63 = vld [vmem:[#allocation8 + $0x580] sm:$0xff] }
  0x6d   :  { %662 = vmatpush2.msra.mxu0 %v312_v3  ;;  %733 = vmatpush2.msra.mxu1 %v408_v4  ;;  %v287_v0 = vld [vmem:[#allocation8 + $0x100] sm:$0xff]  ;;  %v332_v3 = vld [vmem:[#allocation8 + $0x268] sm:$0xff] }
  0x6e   :  { %663 = vmatprep.subr.mxu0 %v310_v5  ;;  %734 = vmatprep.subr.mxu1 %v406_v6  ;;  %v383_v2 = vld [vmem:[#allocation8 + $0x400] sm:$0xff]  ;;  %v428_v4 = vld [vmem:[#allocation8 + $0x568] sm:$0xff] }
  0x6f   :  { %664 = vmatpush2.msra.mxu0 %v309_v7  ;;  %735 = vmatpush2.msra.mxu1 %v405_v8  ;;  %v284_v5 = vld [vmem:[#allocation8 + $0xe8] sm:$0xff]  ;;  %v329_v7 = vld [vmem:[#allocation8 + $0x250] sm:$0xff] }
  0x70   :  { %665 = vmatprep.subr.mxu0 %v307_v9  ;;  %736 = vmatprep.subr.mxu1 %v403_v10  ;;  %v380_v6 = vld [vmem:[#allocation8 + $0x3e8] sm:$0xff]  ;;  %v425_v8 = vld [vmem:[#allocation8 + $0x550] sm:$0xff] }
  0x71   :  { %666 = vmatpush2.msra.mxu0 %v306_v11  ;;  %737 = vmatpush2.msra.mxu1 %v402_v12  ;;  %v281_v9 = vld [vmem:[#allocation8 + $0xd0] sm:$0xff]  ;;  %v326_v11 = vld [vmem:[#allocation8 + $0x238] sm:$0xff] }
  0x72   :  { %667 = vmatprep.subr.mxu0 %v304_v13  ;;  %738 = vmatprep.subr.mxu1 %v400_v14  ;;  %v377_v10 = vld [vmem:[#allocation8 + $0x3d0] sm:$0xff]  ;;  %v422_v12 = vld [vmem:[#allocation8 + $0x538] sm:$0xff] }
  0x73   :  { %668 = vmatpush2.msra.mxu0 %v303_v15  ;;  %739 = vmatpush2.msra.mxu1 %v399_v16  ;;  %v278_v13 = vld [vmem:[#allocation8 + $0xb8] sm:$0xff]  ;;  %v323_v15 = vld [vmem:[#allocation8 + $0x220] sm:$0xff] }
  0x74   :  { %1104 = vmatprep.subr.mxu0 %v350_v17  ;;  %1139 = vmatprep.subr.mxu1 %v446_v18  ;;  %v374_v14 = vld [vmem:[#allocation8 + $0x3b8] sm:$0xff]  ;;  %v419_v16 = vld [vmem:[#allocation8 + $0x520] sm:$0xff] }
  0x75   :  { %v275_v17 = vld [vmem:[#allocation8 + $0xa0] sm:$0xff] }
  0x76   :  { %v371_v18 = vld [vmem:[#allocation8 + $0x3a0] sm:$0xff] }
  0xef   :  { %v175_v30 = vpop.f32.mrf.mxu0  ;;  %v246_v31 = vpop.f32.mrf.mxu1 }
  0xf0   :  { %v1385_v32 = vadd.f32 %v246_v31, %v96_v26  ;;  %v1387_v33 = vadd.f32 %v175_v30, %v88_v27  ;;  %v317_v26 = vld [vmem:[#allocation8 + $0x1f0] sm:$0xff]  ;;  %v314_v30 = vld [vmem:[#allocation8 + $0x1d8] sm:$0xff] }
  0xf1   :  { %v177_v34 = vpop.f32.mrf.mxu0  ;;  %v248_v35 = vpop.f32.mrf.mxu1  ;;  %v413_v27 = vld [vmem:[#allocation8 + $0x4f0] sm:$0xff]  ;;  %v410_v31 = vld [vmem:[#allocation8 + $0x4d8] sm:$0xff] }
  0xf2   :  { %v178_v36 = vadd.f32 %v177_v34, %v92_v28  ;;  %v249_v37 = vadd.f32 %v248_v35, %v100_v29  ;;  %v253_v38 = vmax.f32 %v1385_v32, 0.0  ;;  %v251_v42 = vmax.f32 %v1387_v33, 0.0  ;;  %v269_v28 = vld [vmem:[#allocation8 + $0x70] sm:$0xff]  ;;  %v266_v34 = vld [vmem:[#allocation8 + $0x58] sm:$0xff] }
  0xf3   :  { %v365_v29 = vld [vmem:[#allocation8 + $0x370] sm:$0xff]  ;;  %v362_v35 = vld [vmem:[#allocation8 + $0x358] sm:$0xff]  ;;  %v530_v33 = vpop.f32.mrf.mxu0 }
  0xf4   :  { %v252_v39 = vmax.f32 %v178_v36, 0.0  ;;  %v254_v40 = vmax.f32 %v249_v37, 0.0  ;;  %v1390_v41 = vpop.f32.mrf.mxu1  ;;  %v311_v36 = vld [vmem:[#allocation8 + $0x1c0] sm:$0xff]  ;;  %v887_v32 = vld [vmem:[%s1427_s6] sm:$0x7]  ;;  %s1295_s6 = smov [#allocation9]  }
  0xf5   :  { %v407_v37 = vld [vmem:[#allocation8 + $0x4c0] sm:$0xff] }
  0xf6   :  { %669 = vmatprep.mubr.f32.mxu0 %v252_v39  ;;  %740 = vmatprep.mubr.f32.mxu1 %v254_v40  ;;  %v1180_v46 = vpop.f32.mrf.mxu1 }
  0xf7   :  { %670 = vmatmul.mubr.f32.vlgmr.msra.gmra.mxu0 %v251_v42  ;;  %741 = vmatmul.mubr.f32.vlgmr.msra.gmra.mxu1 %v253_v38  ;;  %v356_v46 = vld [vmem:[#allocation8 + $0x328] sm:$0xff] }
  0xf8   :  { %1105 = vmatpush3.msra.mxu0 %v302_v43  ;;  %1140 = vmatpush3.msra.mxu1 %v398_v44  ;;  %v308_v43 = vld [vmem:[#allocation8 + $0x1a8] sm:$0xff] }
  0xf9   :  { %1106 = vmatprep.subr.mxu0 %v347_v45  ;;  %811 = vmatprep.mubr.f32.mxu0 %v252_v39  ;;  %v263_v39 = vld [vmem:[#allocation8 + $0x40] sm:$0xff]  ;;  %v404_v44 = vld [vmem:[#allocation8 + $0x4a8] sm:$0xff] }
  0xfa   :  { %1141 = vmatprep.subr.mxu1 %v443_v47  ;;  %881 = vmatprep.mubr.f32.mxu1 %v254_v40  ;;  %v359_v40 = vld [vmem:[#allocation8 + $0x340] sm:$0xff]  ;;  %v260_v45 = vld [vmem:[#allocation8 + $0x28] sm:$0xff]  ;;  %v305_v47 = vld [vmem:[#allocation8 + $0x190] sm:$0xff] }
  0xfb   :  { %1107 = vmatpush3.msra.mxu0 %v299_v48  ;;  %1142 = vmatpush3.msra.mxu1 %v395_v49  ;;  %v401_v48 = vld [vmem:[#allocation8 + $0x490] sm:$0xff] }
  0xfc   :  { %1108 = vmatprep.subr.mxu0 %v344_v50  ;;  %1143 = vmatprep.subr.mxu1 %v440_v51  ;;  %v257_v49 = vld [vmem:[#allocation8 + $0x10] sm:$0xff]  ;;  %v910_v51 = vld [vmem:[%s1428_s7] sm:$0x7]  ;;  %s1085_s7 = sshll.u32 %s1295_s6, 4  ;;  %s1086_s7 = int_to_ptr.vmem [resolvable:$true] %s1085_s7 }
  0xfd   :  { %1109 = vmatpush3.msra.mxu0 %v296_v52  ;;  %1144 = vmatpush3.msra.mxu1 %v392_v53  ;;  %v353_v50 = vld [vmem:[#allocation8 + $0x310] sm:$0xff]  ;;  %v929_v52 = vrot.slane %v910_v51, %v1380_v24  ;;  %v911_v53 = vld [vmem:[#allocation2] sm:$0x1]  ;;  %s1259_s14 = scalar_lea.vmem %s1086_s7, 16  ;;  %s1263_s15 = scalar_lea.vmem %s1086_s7, 32 }
  0xfe   :  { %1110 = vmatprep.subr.mxu0 %v341_v54  ;;  %1145 = vmatprep.subr.mxu1 %v437_v55  ;;  %v1294_v54 = vmov 0   ;;  %p1260_p1 = scmp.ne.s32.totalorder %s1086_s7, %s1259_s14  ;;  %p1264_p2 = scmp.lt.s32.totalorder %s1086_s7, %s1086_s7 }
  0xff   :  { %1111 = vmatpush3.msra.mxu0 %v293_v56  ;;  %1146 = vmatpush3.msra.mxu1 %v389_v57  ;;  %v892_v56 = vrot.slane %v887_v32, %v1378_v22  ;;  %p1265_p3 = scmp.lt.s32.totalorder %s1263_s15, %s1259_s14 }
 0x100   :  { %1112 = vmatprep.subr.mxu0 %v338_v58  ;;  %1147 = vmatprep.subr.mxu1 %v434_v59 }
 0x101   :  { %1113 = vmatpush3.msra.mxu0 %v290_v60  ;;  %1148 = vmatpush3.msra.mxu1 %v386_v61  ;;  %v896_v60 = vrot.slane %v887_v32, %v1380_v24  ;;  %v900_v24 = vrot.slane %v887_v32, %v1376_v21  ;;  %p1266_p4 = por %p1265_p3, %p1264_p2 }
 0x102   :  { %1114 = vmatprep.subr.mxu0 %v335_v62  ;;  %1149 = vmatprep.subr.mxu1 %v431_v63 }
 0x103   :  { %1115 = vmatpush3.msra.mxu0 %v287_v0  ;;  %1150 = vmatpush3.msra.mxu1 %v383_v2  ;;  %p1267_p5 = pnand %p1266_p4, %p1260_p1 }
 0x104   :  { %1116 = vmatprep.subr.mxu0 %v332_v3  ;;  %1151 = vmatprep.subr.mxu1 %v428_v4  ;;  %v925_v4 = vrot.slane %v910_v51, %v1378_v22 }
 0x105   :  { %1117 = vmatpush3.msra.mxu0 %v284_v5  ;;  %1152 = vmatpush3.msra.mxu1 %v380_v6 }
 0x106   :  { %1118 = vmatprep.subr.mxu0 %v329_v7  ;;  %1153 = vmatprep.subr.mxu1 %v425_v8 }
 0x107   :  { %1119 = vmatpush3.msra.mxu0 %v281_v9  ;;  %1154 = vmatpush3.msra.mxu1 %v377_v10 }
 0x108   :  { %1120 = vmatprep.subr.mxu0 %v326_v11  ;;  %1155 = vmatprep.subr.mxu1 %v422_v12 }
 0x109   :  { %1121 = vmatpush3.msra.mxu0 %v278_v13  ;;  %1156 = vmatpush3.msra.mxu1 %v374_v14 }
 0x10a   :  { %1122 = vmatprep.subr.mxu0 %v323_v15  ;;  %1157 = vmatprep.subr.mxu1 %v419_v16  ;;  %v933_v15 = vrot.slane %v910_v51, %v1376_v21 }
 0x10b   :  { %1123 = vmatpush3.msra.mxu0 %v275_v17  ;;  %1158 = vmatpush3.msra.mxu1 %v371_v18 }
 0x10c   :  { %1124 = vmatprep.subr.mxu0 %v320_v19  ;;  %1159 = vmatprep.subr.mxu1 %v416_v20 }
 0x10d   :  { %1125 = vmatpush3.msra.mxu0 %v272_v23  ;;  %1160 = vmatpush3.msra.mxu1 %v368_v25 }
 0x10e   :  { %1126 = vmatprep.subr.mxu0 %v317_v26  ;;  %1161 = vmatprep.subr.mxu1 %v413_v27 }
 0x10f   :  { %1127 = vmatpush3.msra.mxu0 %v269_v28  ;;  %1162 = vmatpush3.msra.mxu1 %v365_v29 }
 0x110   :  { %1128 = vmatprep.subr.mxu0 %v314_v30  ;;  %1163 = vmatprep.subr.mxu1 %v410_v31 }
 0x111   :  { %1129 = vmatpush3.msra.mxu0 %v266_v34  ;;  %1164 = vmatpush3.msra.mxu1 %v362_v35 }
 0x112   :  { %1130 = vmatprep.subr.mxu0 %v311_v36  ;;  %1165 = vmatprep.subr.mxu1 %v407_v37 }
 0x113   :  { %1131 = vmatpush3.msra.mxu0 %v263_v39  ;;  %1166 = vmatpush3.msra.mxu1 %v359_v40 }
 0x114   :  { %1132 = vmatprep.subr.mxu0 %v308_v43  ;;  %1167 = vmatprep.subr.mxu1 %v404_v44 }
 0x115   :  { %1133 = vmatpush3.msra.mxu0 %v260_v45  ;;  %1168 = vmatpush3.msra.mxu1 %v356_v46 }
 0x116   :  { %1134 = vmatprep.subr.mxu0 %v305_v47  ;;  %1169 = vmatprep.subr.mxu1 %v401_v48 }
 0x117   :  { %1135 = vmatpush3.msra.mxu0 %v257_v49  ;;  %1170 = vmatpush3.msra.mxu1 %v353_v50 }
 0x118   :  { %812 = vmatmul.mubr.f32.vlgmr.msra.gmra.mxu0 %v251_v42  ;;  %882 = vmatmul.mubr.f32.vlgmr.msra.gmra.mxu1 %v253_v38  ;;  %v532_v42 = vpop.f32.mrf.mxu0 }
 0x119   :  { %1181 = vmatprep.subr.mxu1 %v1292_v1  ;;  %1183 = vmatprep.mubr.msk.f32.mxu1 %vm1293_vm3, %v1292_v1 }
 0x11a   :  { %1001 = vmatprep.mubr.f32.mxu0 %v929_v52  ;;  %1197 = vset.pattern.permute.xlu0 %v1294_v54 }
 0x11b   :  { %914 = vperm.xlu0 %1197, %v911_v53  }
 0x196   :  { %v915_v18 = vpop.permute.xlu0 %914 }
 0x197   :  { %v920_v19 = vrot.slane %v915_v18, %v1378_v22 }
 0x1b7   :  { %v671_v38 = vpop.f32.mrf.mxu0  ;;  %v742_v55 = vpop.f32.mrf.mxu1 }
 0x1b8   :  { %v672_v1 = vadd.f32 %v671_v38, %v530_v33 }
 0x1b9   :  { %v673_v57 = vpop.f32.mrf.mxu0  ;;  %v744_v61 = vpop.f32.mrf.mxu1 }
 0x1ba   :  { %v743_v58 = vadd.f32 %v742_v55, %v672_v1  ;;  %v674_v59 = vadd.f32 %v673_v57, %v532_v42 }
 0x1bc   :  { %v745_v62 = vadd.f32 %v744_v61, %v674_v59  ;;  %v904_v63 = vadd.f32 %v892_v56, %v743_v58 }
 0x1be   :  { %v905_v0 = vadd.f32 %v896_v60, %v745_v62  ;;  %v907_v3 = vmax.f32 %v904_v63, 0.0 }
 0x1c0   :  { %v908_v2 = vmax.f32 %v905_v0, 0.0 }
 0x1c2   :  { %967 = vmatprep.subr.mxu0 %v908_v2 }
 0x1c3   :  { %968 = vmatpush1.xpose.msra.mxu0 %v907_v3 }
 0x1c6   :  { %1002 = vmatmul.mubr.f32.vlgmr.msra.gmra.mxu0 %v925_v4 }
 0x1d8   :  { %v1136_v5 = vpop.f32.mrf.mxu0  ;;  %v1171_v6 = vpop.f32.mrf.mxu1 }
 0x1da   :  { %v1137_v7 = vpop.f32.mrf.mxu0  ;;  %v1172_v8 = vpop.f32.mrf.mxu1 }
 0x1db   :  { %v1138_v9 = vadd.f32 %v1137_v7, %v1136_v5  ;;  %v1173_v11 = vadd.f32 %v1172_v8, %v1171_v6 }
 0x1dd   :  { %v814_v10 = vadd.f32 %v1138_v9, %v1390_v41 }
 0x1df   :  { %v884_v12 = vadd.f32 %v1173_v11, %v814_v10 }
 0x1e1   :  { %v906_v13 = vadd.f32 %v900_v24, %v884_v12 }
 0x1e3   :  { %v909_v14 = vmax.f32 %v906_v13, 0.0 }
 0x1e5   :  { %1182 = vmatpush3.xpose.msra.mxu1 %v909_v14 }
 0x1e8   :  { %1184 = vmatmul.mubr.f32.vlgmr.msra.gmra.mxu1 %v933_v15 }
 0x286   :  { %v1003_v16 = vpop.f32.mrf.mxu0 }
 0x287   :  { %v1004_v20 = vadd.f32 %v1003_v16, %v920_v19 }
 0x288   :  { %v1005_v17 = vpop.f32.mrf.mxu0 }
 0x2a8   :  { %v1073_v23 = vpop.f32.mrf.mxu1 }
 0x2a9   :  { %v1074_v41 = vadd.f32 %v1073_v23, %v1004_v20 }
 0x2aa   :  { %v1185_v25 = vpop.f32.mrf.mxu1 }
 0x2ab   :  { %1078 = vst.msk [vmem:[#allocation9] sm:$0x1] %vm1077_vm4, %v1074_v41 }
 0x2ac   :  { %1270 = shalt.err (!%p1267_p5)
}
 0x2ad   :  { %1088 = dma.vmem_to_hbm [thread:$0]  %s1086_s7, 16, %s1430_s9, [#allocation5]  }
 0x2ae   :  { %1283 = dma.done.wait [#allocation5], 16  }
 0x2af   :  { %1284 = vsyncadd [#allocation5], 4294967280 }
 0x2b0   :  { %1092 = vsyncpa [#allocation4], 1 }
 0x2b1   :  { %1093 = vsyncpa [#allocation7], 1 }
 0x2b2   :  { %1094 = vsyncpa [#allocation5], 1 }

</bundles_post_ra>
